<compile_context>
chip_gen: v5e
topology: v5e:2x2
jax: 0.10.0
libtpu: 0.0.40
codegen_flags: <defaults>
</compile_context>

<pallas_src>
import functools

import jax
import jax.numpy as jnp
from jax.experimental import pallas as pl
from jax.experimental.pallas import tpu as pltpu

KSIZES = (3, 5, 7)
KMAX = 7
HALO = KMAX - 1            # 6 extra (zero) slices on the depth / height axes
KH8 = 8                    # kh axis padded 7 -> 8 (one native f32 sublane tile)


# --------------------------------------------------------------------------- #
# Kernels
# --------------------------------------------------------------------------- #
def _conv_kernel_fused_kw(wt_ref, b_ref, xs_ref, o_ref):
    """One (batch, output-depth) slab of the fused 3-kernel conv + ReLU.

    wt_ref: (7, C, 56)        per-kw weights, 56 = kd*8 + kh (kh zero-padded to 8)
    b_ref : (C, 1)            fused bias
    xs_ref: (1, D+6, 8, Lin)  kh-shifted, depth-padded input (flat y*(W+6)+x lanes)
    o_ref : (1, 1, C, Lo)     one dense output slab for this output depth
    """
    dd = pl.program_id(1)
    lo = o_ref.shape[-1]

    def tap(kw):
        # (7, 8, Lo) window: depth taps dd..dd+6, all 8 kh rows, lanes shifted by kw.
        rhs = xs_ref[0, pl.ds(dd, KMAX), :, pl.ds(kw, lo)]
        return jnp.dot(wt_ref[kw], rhs.reshape(KMAX * KH8, lo),
                       preferred_element_type=jnp.float32)

    acc = tap(0)
    for kw in range(1, KMAX):
        acc += tap(kw)
    o_ref[0, 0] = jnp.maximum(acc + b_ref[...], 0.0).astype(o_ref.dtype)


def _conv_kernel_pretapped(wt_ref, b_ref, xs_ref, o_ref):
    """Fallback: all (kw, kh) taps pre-materialized by the wrapper (no lane slicing).

    wt_ref: (7, C, 56)        per-kd weights, 56 = kw*8 + kh
    xs_ref: (1, D+6, 56, Lo)  (kw, kh)-shifted, depth-padded input
    o_ref : (1, 1, C, Lo)
    """
    dd = pl.program_id(1)
    acc = jnp.dot(wt_ref[0], xs_ref[0, dd], preferred_element_type=jnp.float32)
    for kd in range(1, KMAX):
        acc += jnp.dot(wt_ref[kd], xs_ref[0, dd + kd],
                       preferred_element_type=jnp.float32)
    o_ref[0, 0] = jnp.maximum(acc + b_ref[...], 0.0).astype(o_ref.dtype)


# --------------------------------------------------------------------------- #
# Parameter fusion / helpers
# --------------------------------------------------------------------------- #
def _fuse_params(params):
    """Zero-embed the k=3/5/7 weights into the 7^3 tap space.

    Returns (wt_kw, wt_kd, bias):
      wt_kw[kw][c, kd*8+kh] for the fused-kw kernel,
      wt_kd[kd][c, kw*8+kh] for the pre-tapped fallback,
      bias (C, 1).
    """
    ws, bs = [], []
    for (wgt, b), k in zip(params, KSIZES):
        f = wgt.shape[0]
        off = (KMAX - k) // 2
        w7 = jnp.zeros((f, KMAX, KMAX, KMAX), jnp.float32)
        w7 = w7.at[:, off:off + k, off:off + k, off:off + k].set(wgt)
        ws.append(w7)
        bs.append(b)
    w7 = jnp.concatenate(ws, axis=0)                         # (C, kd, kh, kw)
    w7 = jnp.pad(w7, ((0, 0), (0, 0), (0, 1), (0, 0)))       # kh 7 -> 8 (zero row)
    wt_kw = jnp.transpose(w7, (3, 0, 1, 2)).reshape(KMAX, -1, KMAX * KH8)
    wt_kd = jnp.transpose(w7, (1, 0, 3, 2)).reshape(KMAX, -1, KMAX * KH8)
    bias = jnp.concatenate(bs).reshape(-1, 1).astype(jnp.float32)
    return wt_kw, wt_kd, bias


def _round_up(v, m):
    return ((v + m - 1) // m) * m


def _vmem_limit_bytes(block_bytes):
    """Generation-aware scoped-VMEM request with headroom for Mosaic scratch."""
    try:
        cap = int(getattr(pltpu.get_tpu_info(), "vmem_capacity_bytes",
                          64 * 1024 * 1024))
    except Exception:
        cap = 64 * 1024 * 1024                               # conservative (v7x physical)
    ceiling = min((cap * 7) // 10, 100 * 1024 * 1024)        # ~45 MiB v7x, ~90 MiB v5e/v6e
    want = 2 * block_bytes + 8 * 1024 * 1024                 # double-buffer + slack
    return int(min(max(want, 32 * 1024 * 1024), ceiling))


# --------------------------------------------------------------------------- #
# Forward
# --------------------------------------------------------------------------- #
@functools.partial(jax.jit, static_argnames=("fused_kw",))
def _spectral_conv_jit(x, params, fused_kw=True):
    n, d, h, w = x.shape
    c = sum(wgt.shape[0] for wgt, _ in params)               # 3 * num_filters
    wq = w + HALO                                            # padded row width W+6
    lo = _round_up(h * wq, 128)                              # lane-dense output length
    lin = lo + 128                                           # room for the kw<=6 lane shift
    dpad = d + HALO

    wt_kw, wt_kd, bias = _fuse_params(params)

    # Pad depth/height/width once by the k=7 halo, then materialize only the 7 kh
    # row-shifts, flattened as j = y*(W+6) + x on the (zero-padded) lane axis.
    p = KMAX // 2
    xp = jnp.pad(x, ((0, 0), (p, p), (p, p), (p, p)))        # (N, D+6, H+6, W+6)
    rows = [xp[:, :, kh:kh + h, :].reshape(n, dpad, h * wq) for kh in range(KMAX)]
    xs = jnp.stack(rows, axis=2)                             # (N, D+6, 7, H*(W+6))
    xs = jnp.pad(xs, ((0, 0), (0, 0), (0, 1), (0, lin - h * wq)))  # (N, D+6, 8, Lin)

    if fused_kw:
        kernel, wt, xin = _conv_kernel_fused_kw, wt_kw, xs
        tap_dim, lane_in = KH8, lin
    else:
        # Fallback path: pre-apply the 7 kw lane shifts in XLA (full tap expansion).
        kernel, wt = _conv_kernel_pretapped, wt_kd
        xin = jnp.concatenate([xs[..., kw:kw + lo] for kw in range(KMAX)], axis=2)
        tap_dim, lane_in = KMAX * KH8, lo

    block_bytes = (dpad * _round_up(tap_dim, 8) * _round_up(lane_in, 128)
                   + _round_up(c, 8) * lo) * 4

    out = pl.pallas_call(
        kernel,
        out_shape=jax.ShapeDtypeStruct((n, d, c, lo), jnp.float32),
        grid=(n, d),
        in_specs=[
            pl.BlockSpec((KMAX, c, KMAX * KH8), lambda i, j: (0, 0, 0)),   # weights
            pl.BlockSpec((c, 1), lambda i, j: (0, 0)),                     # bias
            pl.BlockSpec((1, dpad, tap_dim, lane_in), lambda i, j: (i, 0, 0, 0)),
        ],
        out_specs=pl.BlockSpec((1, 1, c, lo), lambda i, j: (i, j, 0, 0)),
        compiler_params=pltpu.CompilerParams(
            dimension_semantics=("parallel", "parallel"),
            vmem_limit_bytes=_vmem_limit_bytes(block_bytes)),
    )(wt, bias, xin)

    # Strip the lane/width padding and go to NCDHW; this only touches the output,
    # which is far smaller than the streamed input.
    out = out[..., :h * wq].reshape(n, d, c, h, wq)[..., :w]
    return jnp.transpose(out, (0, 2, 1, 3, 4))               # (N, 3F, D, H, W)


_IMPL_CHOICE = {}


def spectral_conv_forward(x, params):
    """x: (N, D, H, W) float32 -> (N, 3*num_filters, D, H, W).
    Matches torch: cat([relu(conv3d_k(x.unsqueeze(1))) for k in (3,5,7)], dim=1).

    One-time self-check: prefer the bandwidth-lean fused-kw kernel, but fall back
    to the pre-tapped kernel if in-kernel lane-offset slicing fails to lower (or
    mis-compares) on the current toolchain. The choice is cached.
    """
    fused = _IMPL_CHOICE.get("fused_kw")
    if fused is None:
        try:
            out = jax.block_until_ready(_spectral_conv_jit(x, params, fused_kw=True))
            chk = jax.block_until_ready(_spectral_conv_jit(x, params, fused_kw=False))
            fused = bool(jnp.allclose(out, chk, atol=1e-4, rtol=1e-4))
            _IMPL_CHOICE["fused_kw"] = fused
            return out if fused else chk
        except Exception:
            # TODO(synk): drop this fallback once unaligned in-kernel lane slicing
            # is guaranteed by the deployed Mosaic version.
            _IMPL_CHOICE["fused_kw"] = False
            fused = False
    return _spectral_conv_jit(x, params, fused_kw=fused)


# --------------------------------------------------------------------------- #
# Init / reference / self-test
# --------------------------------------------------------------------------- #
def init_params(key, num_filters):
    # Deterministic init matching PyTorch Conv3d defaults (fan_in = 1*k^3).
    params = []
    for k, sub in zip(KSIZES, jax.random.split(key, 3)):
        wk, bk = jax.random.split(sub)
        bound = 1.0 / ((k * k * k) ** 0.5)
        wgt = jax.random.uniform(wk, (num_filters, k, k, k),
                                 minval=-bound, maxval=bound, dtype=jnp.float32)
        b = jax.random.uniform(bk, (num_filters,),
                               minval=-bound, maxval=bound, dtype=jnp.float32)
        params.append((wgt, b))
    return params


def reference_forward(x, params):
    # Pure-JAX reference (lax conv) for correctness checking.
    xin = x[:, None]                                         # (N, 1, D, H, W)
    outs = []
    for (wgt, b), k in zip(params, KSIZES):
        p = k // 2
        o = jax.lax.conv_general_dilated(
            xin, wgt[:, None],                               # OIDHW with I=1
            window_strides=(1, 1, 1),
            padding=[(p, p)] * 3,
            dimension_numbers=("NCDHW", "OIDHW", "NCDHW"))
        o = jnp.maximum(o + b[None, :, None, None, None], 0.0)
        outs.append(o)
    return jnp.concatenate(outs, axis=1)


if __name__ == "__main__":
    key = jax.random.PRNGKey(0)
    kx, kp = jax.random.split(key)

    N, D, H, W = 2, 8, 8, 8          # spectral volume (batch, depth/bands, H, W)
    num_filters = 4

    x = jax.random.normal(kx, (N, D, H, W), dtype=jnp.float32)
    params = init_params(kp, num_filters)

    out = jax.block_until_ready(spectral_conv_forward(x, params))

    assert out.shape == (N, 3 * num_filters, D, H, W)
    ref = reference_forward(x, params)
    assert jnp.allclose(out, ref, atol=1e-4, rtol=1e-4), "mismatch vs reference"

    print("KERNEL_OK")
</pallas_src>

<mosaic_0001>
module attributes {stable_mosaic.version = 11 : i64} {
  func.func @_conv_kernel_fused_kw(%arg0: i32, %arg1: i32, %arg2: memref<7x12x56xf32, #tpu.memory_space<vmem>>, %arg3: memref<12x1xf32, #tpu.memory_space<vmem>>, %arg4: memref<1x14x8x256xf32, #tpu.memory_space<vmem>>, %arg5: memref<1x1x12x128xf32, #tpu.memory_space<vmem>>) attributes {dimension_semantics = [#tpu.dimension_semantics<parallel>, #tpu.dimension_semantics<parallel>], iteration_bounds = array<i64: 2, 8>, scalar_prefetch = 0 : i64, scratch_operands = 0 : i64, tpu.core_type = #tpu.core_type<tc>, window_params = [{pipeline_mode = #tpu.pipeline_mode<synchronous>, transform_indices = @transform_0, window_bounds = array<i64: 7, 12, 56>}, {pipeline_mode = #tpu.pipeline_mode<synchronous>, transform_indices = @transform_1, window_bounds = array<i64: 12, 1>}, {transform_indices = @transform_2, window_bounds = array<i64: 1, 14, 8, 256>}, {transform_indices = @transform_3, window_bounds = array<i64: 1, 1, 12, 128>}]} {
    %c0 = arith.constant 0 : index
    %0 = arith.index_cast %arg1 : i32 to index
    %c0_0 = arith.constant 0 : index
    %c0_1 = arith.constant 0 : index
    %1 = vector.load %arg4[%c0, %0, %c0_0, %c0_1] : memref<1x14x8x256xf32, #tpu.memory_space<vmem>>, vector<1x7x8x128xf32>
    %2 = vector.shape_cast %1 : vector<1x7x8x128xf32> to vector<7x8x128xf32>
    %c0_2 = arith.constant 0 : index
    %c0_3 = arith.constant 0 : index
    %c0_4 = arith.constant 0 : index
    %3 = vector.load %arg2[%c0_2, %c0_3, %c0_4] : memref<7x12x56xf32, #tpu.memory_space<vmem>>, vector<1x12x56xf32>
    %4 = vector.shape_cast %3 : vector<1x12x56xf32> to vector<12x56xf32>
    %5 = vector.shape_cast %2 : vector<7x8x128xf32> to vector<56x128xf32>
    %cst = arith.constant dense<0.000000e+00> : vector<12x128xf32>
    %6 = tpu.matmul %4, %5, %cst {dimension_numbers = #tpu.dot_dimension_numbers<[1], [0], [0], [1], [0, 0, 1, 1], [], []>} : vector<12x56xf32>, vector<56x128xf32>, vector<12x128xf32> -> vector<12x128xf32>
    %c0_5 = arith.constant 0 : index
    %7 = arith.index_cast %arg1 : i32 to index
    %c0_6 = arith.constant 0 : index
    %c1 = arith.constant 1 : index
    %8 = vector.load %arg4[%c0_5, %7, %c0_6, %c1] : memref<1x14x8x256xf32, #tpu.memory_space<vmem>>, vector<1x7x8x128xf32>
    %9 = vector.shape_cast %8 : vector<1x7x8x128xf32> to vector<7x8x128xf32>
    %c1_7 = arith.constant 1 : index
    %c0_8 = arith.constant 0 : index
    %c0_9 = arith.constant 0 : index
    %10 = vector.load %arg2[%c1_7, %c0_8, %c0_9] : memref<7x12x56xf32, #tpu.memory_space<vmem>>, vector<1x12x56xf32>
    %11 = vector.shape_cast %10 : vector<1x12x56xf32> to vector<12x56xf32>
    %12 = vector.shape_cast %9 : vector<7x8x128xf32> to vector<56x128xf32>
    %cst_10 = arith.constant dense<0.000000e+00> : vector<12x128xf32>
    %13 = tpu.matmul %11, %12, %cst_10 {dimension_numbers = #tpu.dot_dimension_numbers<[1], [0], [0], [1], [0, 0, 1, 1], [], []>} : vector<12x56xf32>, vector<56x128xf32>, vector<12x128xf32> -> vector<12x128xf32>
    %14 = arith.addf %6, %13 : vector<12x128xf32>
    %c0_11 = arith.constant 0 : index
    %15 = arith.index_cast %arg1 : i32 to index
    %c0_12 = arith.constant 0 : index
    %c2 = arith.constant 2 : index
    %16 = vector.load %arg4[%c0_11, %15, %c0_12, %c2] : memref<1x14x8x256xf32, #tpu.memory_space<vmem>>, vector<1x7x8x128xf32>
    %17 = vector.shape_cast %16 : vector<1x7x8x128xf32> to vector<7x8x128xf32>
    %c2_13 = arith.constant 2 : index
    %c0_14 = arith.constant 0 : index
    %c0_15 = arith.constant 0 : index
    %18 = vector.load %arg2[%c2_13, %c0_14, %c0_15] : memref<7x12x56xf32, #tpu.memory_space<vmem>>, vector<1x12x56xf32>
    %19 = vector.shape_cast %18 : vector<1x12x56xf32> to vector<12x56xf32>
    %20 = vector.shape_cast %17 : vector<7x8x128xf32> to vector<56x128xf32>
    %cst_16 = arith.constant dense<0.000000e+00> : vector<12x128xf32>
    %21 = tpu.matmul %19, %20, %cst_16 {dimension_numbers = #tpu.dot_dimension_numbers<[1], [0], [0], [1], [0, 0, 1, 1], [], []>} : vector<12x56xf32>, vector<56x128xf32>, vector<12x128xf32> -> vector<12x128xf32>
    %22 = arith.addf %14, %21 : vector<12x128xf32>
    %c0_17 = arith.constant 0 : index
    %23 = arith.index_cast %arg1 : i32 to index
    %c0_18 = arith.constant 0 : index
    %c3 = arith.constant 3 : index
    %24 = vector.load %arg4[%c0_17, %23, %c0_18, %c3] : memref<1x14x8x256xf32, #tpu.memory_space<vmem>>, vector<1x7x8x128xf32>
    %25 = vector.shape_cast %24 : vector<1x7x8x128xf32> to vector<7x8x128xf32>
    %c3_19 = arith.constant 3 : index
    %c0_20 = arith.constant 0 : index
    %c0_21 = arith.constant 0 : index
    %26 = vector.load %arg2[%c3_19, %c0_20, %c0_21] : memref<7x12x56xf32, #tpu.memory_space<vmem>>, vector<1x12x56xf32>
    %27 = vector.shape_cast %26 : vector<1x12x56xf32> to vector<12x56xf32>
    %28 = vector.shape_cast %25 : vector<7x8x128xf32> to vector<56x128xf32>
    %cst_22 = arith.constant dense<0.000000e+00> : vector<12x128xf32>
    %29 = tpu.matmul %27, %28, %cst_22 {dimension_numbers = #tpu.dot_dimension_numbers<[1], [0], [0], [1], [0, 0, 1, 1], [], []>} : vector<12x56xf32>, vector<56x128xf32>, vector<12x128xf32> -> vector<12x128xf32>
    %30 = arith.addf %22, %29 : vector<12x128xf32>
    %c0_23 = arith.constant 0 : index
    %31 = arith.index_cast %arg1 : i32 to index
    %c0_24 = arith.constant 0 : index
    %c4 = arith.constant 4 : index
    %32 = vector.load %arg4[%c0_23, %31, %c0_24, %c4] : memref<1x14x8x256xf32, #tpu.memory_space<vmem>>, vector<1x7x8x128xf32>
    %33 = vector.shape_cast %32 : vector<1x7x8x128xf32> to vector<7x8x128xf32>
    %c4_25 = arith.constant 4 : index
    %c0_26 = arith.constant 0 : index
    %c0_27 = arith.constant 0 : index
    %34 = vector.load %arg2[%c4_25, %c0_26, %c0_27] : memref<7x12x56xf32, #tpu.memory_space<vmem>>, vector<1x12x56xf32>
    %35 = vector.shape_cast %34 : vector<1x12x56xf32> to vector<12x56xf32>
    %36 = vector.shape_cast %33 : vector<7x8x128xf32> to vector<56x128xf32>
    %cst_28 = arith.constant dense<0.000000e+00> : vector<12x128xf32>
    %37 = tpu.matmul %35, %36, %cst_28 {dimension_numbers = #tpu.dot_dimension_numbers<[1], [0], [0], [1], [0, 0, 1, 1], [], []>} : vector<12x56xf32>, vector<56x128xf32>, vector<12x128xf32> -> vector<12x128xf32>
    %38 = arith.addf %30, %37 : vector<12x128xf32>
    %c0_29 = arith.constant 0 : index
    %39 = arith.index_cast %arg1 : i32 to index
    %c0_30 = arith.constant 0 : index
    %c5 = arith.constant 5 : index
    %40 = vector.load %arg4[%c0_29, %39, %c0_30, %c5] : memref<1x14x8x256xf32, #tpu.memory_space<vmem>>, vector<1x7x8x128xf32>
    %41 = vector.shape_cast %40 : vector<1x7x8x128xf32> to vector<7x8x128xf32>
    %c5_31 = arith.constant 5 : index
    %c0_32 = arith.constant 0 : index
    %c0_33 = arith.constant 0 : index
    %42 = vector.load %arg2[%c5_31, %c0_32, %c0_33] : memref<7x12x56xf32, #tpu.memory_space<vmem>>, vector<1x12x56xf32>
    %43 = vector.shape_cast %42 : vector<1x12x56xf32> to vector<12x56xf32>
    %44 = vector.shape_cast %41 : vector<7x8x128xf32> to vector<56x128xf32>
    %cst_34 = arith.constant dense<0.000000e+00> : vector<12x128xf32>
    %45 = tpu.matmul %43, %44, %cst_34 {dimension_numbers = #tpu.dot_dimension_numbers<[1], [0], [0], [1], [0, 0, 1, 1], [], []>} : vector<12x56xf32>, vector<56x128xf32>, vector<12x128xf32> -> vector<12x128xf32>
    %46 = arith.addf %38, %45 : vector<12x128xf32>
    %c0_35 = arith.constant 0 : index
    %47 = arith.index_cast %arg1 : i32 to index
    %c0_36 = arith.constant 0 : index
    %c6 = arith.constant 6 : index
    %48 = vector.load %arg4[%c0_35, %47, %c0_36, %c6] : memref<1x14x8x256xf32, #tpu.memory_space<vmem>>, vector<1x7x8x128xf32>
    %49 = vector.shape_cast %48 : vector<1x7x8x128xf32> to vector<7x8x128xf32>
    %c6_37 = arith.constant 6 : index
    %c0_38 = arith.constant 0 : index
    %c0_39 = arith.constant 0 : index
    %50 = vector.load %arg2[%c6_37, %c0_38, %c0_39] : memref<7x12x56xf32, #tpu.memory_space<vmem>>, vector<1x12x56xf32>
    %51 = vector.shape_cast %50 : vector<1x12x56xf32> to vector<12x56xf32>
    %52 = vector.shape_cast %49 : vector<7x8x128xf32> to vector<56x128xf32>
    %cst_40 = arith.constant dense<0.000000e+00> : vector<12x128xf32>
    %53 = tpu.matmul %51, %52, %cst_40 {dimension_numbers = #tpu.dot_dimension_numbers<[1], [0], [0], [1], [0, 0, 1, 1], [], []>} : vector<12x56xf32>, vector<56x128xf32>, vector<12x128xf32> -> vector<12x128xf32>
    %54 = arith.addf %46, %53 : vector<12x128xf32>
    %c0_41 = arith.constant 0 : index
    %c0_42 = arith.constant 0 : index
    %55 = vector.load %arg3[%c0_41, %c0_42] : memref<12x1xf32, #tpu.memory_space<vmem>>, vector<12x1xf32>
    %56 = vector.broadcast %55 : vector<12x1xf32> to vector<12x128xf32>
    %57 = arith.addf %54, %56 : vector<12x128xf32>
    %cst_43 = arith.constant 0.000000e+00 : f32
    %58 = vector.broadcast %cst_43 : f32 to vector<12x128xf32>
    %59 = arith.maximumf %57, %58 : vector<12x128xf32>
    %c0_44 = arith.constant 0 : index
    %c0_45 = arith.constant 0 : index
    %c0_46 = arith.constant 0 : index
    %c0_47 = arith.constant 0 : index
    %60 = vector.load %arg5[%c0_44, %c0_45, %c0_46, %c0_47] : memref<1x1x12x128xf32, #tpu.memory_space<vmem>>, vector<1x1x12x128xf32>
    %61 = vector.shape_cast %60 : vector<1x1x12x128xf32> to vector<12x128xf32>
    %62 = vector.shape_cast %59 : vector<12x128xf32> to vector<1x1x12x128xf32>
    tpu.vector_store %arg5[%c0_44, %c0_45, %c0_46, %c0_47], %62 {strides = array<i32>} : memref<1x1x12x128xf32, #tpu.memory_space<vmem>>, vector<1x1x12x128xf32>,
    return
  }
  func.func @transform_0(%arg0: i32, %arg1: i32) -> (i32, i32, i32) {
    %c0_i32 = arith.constant 0 : i32
    %c0_i32_0 = arith.constant 0 : i32
    %c0_i32_1 = arith.constant 0 : i32
    %c0_i32_2 = arith.constant 0 : i32
    return %c0_i32, %c0_i32_0, %c0_i32_1 : i32, i32, i32
  }
  func.func @transform_1(%arg0: i32, %arg1: i32) -> (i32, i32) {
    %c0_i32 = arith.constant 0 : i32
    %c0_i32_0 = arith.constant 0 : i32
    %c0_i32_1 = arith.constant 0 : i32
    return %c0_i32, %c0_i32_0 : i32, i32
  }
  func.func @transform_2(%arg0: i32, %arg1: i32) -> (i32, i32, i32, i32) {
    %c0_i32 = arith.constant 0 : i32
    %c0_i32_0 = arith.constant 0 : i32
    %c0_i32_1 = arith.constant 0 : i32
    %c0_i32_2 = arith.constant 0 : i32
    return %arg0, %c0_i32, %c0_i32_0, %c0_i32_1 : i32, i32, i32, i32
  }
  func.func @transform_3(%arg0: i32, %arg1: i32) -> (i32, i32, i32, i32) {
    %c0_i32 = arith.constant 0 : i32
    %c0_i32_0 = arith.constant 0 : i32
    %c0_i32_1 = arith.constant 0 : i32
    return %arg0, %arg1, %c0_i32, %c0_i32_0 : i32, i32, i32, i32
  }
}

module attributes {stable_mosaic.version = 11 : i64} {
  func.func @_conv_kernel_pretapped(%arg0: i32, %arg1: i32, %arg2: memref<7x12x56xf32, #tpu.memory_space<vmem>>, %arg3: memref<12x1xf32, #tpu.memory_space<vmem>>, %arg4: memref<1x14x56x128xf32, #tpu.memory_space<vmem>>, %arg5: memref<1x1x12x128xf32, #tpu.memory_space<vmem>>) attributes {dimension_semantics = [#tpu.dimension_semantics<parallel>, #tpu.dimension_semantics<parallel>], iteration_bounds = array<i64: 2, 8>, scalar_prefetch = 0 : i64, scratch_operands = 0 : i64, tpu.core_type = #tpu.core_type<tc>, window_params = [{pipeline_mode = #tpu.pipeline_mode<synchronous>, transform_indices = @transform_0, window_bounds = array<i64: 7, 12, 56>}, {pipeline_mode = #tpu.pipeline_mode<synchronous>, transform_indices = @transform_1, window_bounds = array<i64: 12, 1>}, {transform_indices = @transform_2, window_bounds = array<i64: 1, 14, 56, 128>}, {transform_indices = @transform_3, window_bounds = array<i64: 1, 1, 12, 128>}]} {
    %c0 = arith.constant 0 : index
    %c0_0 = arith.constant 0 : index
    %c0_1 = arith.constant 0 : index
    %0 = vector.load %arg2[%c0, %c0_0, %c0_1] : memref<7x12x56xf32, #tpu.memory_space<vmem>>, vector<1x12x56xf32>
    %1 = vector.shape_cast %0 : vector<1x12x56xf32> to vector<12x56xf32>
    %c0_2 = arith.constant 0 : index
    %2 = arith.index_cast %arg1 : i32 to index
    %c0_3 = arith.constant 0 : index
    %c0_4 = arith.constant 0 : index
    %3 = vector.load %arg4[%c0_2, %2, %c0_3, %c0_4] : memref<1x14x56x128xf32, #tpu.memory_space<vmem>>, vector<1x1x56x128xf32>
    %4 = vector.shape_cast %3 : vector<1x1x56x128xf32> to vector<56x128xf32>
    %cst = arith.constant dense<0.000000e+00> : vector<12x128xf32>
    %5 = tpu.matmul %1, %4, %cst {dimension_numbers = #tpu.dot_dimension_numbers<[1], [0], [0], [1], [0, 0, 1, 1], [], []>} : vector<12x56xf32>, vector<56x128xf32>, vector<12x128xf32> -> vector<12x128xf32>
    %c1 = arith.constant 1 : index
    %c0_5 = arith.constant 0 : index
    %c0_6 = arith.constant 0 : index
    %6 = vector.load %arg2[%c1, %c0_5, %c0_6] : memref<7x12x56xf32, #tpu.memory_space<vmem>>, vector<1x12x56xf32>
    %7 = vector.shape_cast %6 : vector<1x12x56xf32> to vector<12x56xf32>
    %c1_i32 = arith.constant 1 : i32
    %8 = arith.addi %arg1, %c1_i32 : i32
    %c0_7 = arith.constant 0 : index
    %9 = arith.index_cast %8 : i32 to index
    %c0_8 = arith.constant 0 : index
    %c0_9 = arith.constant 0 : index
    %10 = vector.load %arg4[%c0_7, %9, %c0_8, %c0_9] : memref<1x14x56x128xf32, #tpu.memory_space<vmem>>, vector<1x1x56x128xf32>
    %11 = vector.shape_cast %10 : vector<1x1x56x128xf32> to vector<56x128xf32>
    %cst_10 = arith.constant dense<0.000000e+00> : vector<12x128xf32>
    %12 = tpu.matmul %7, %11, %cst_10 {dimension_numbers = #tpu.dot_dimension_numbers<[1], [0], [0], [1], [0, 0, 1, 1], [], []>} : vector<12x56xf32>, vector<56x128xf32>, vector<12x128xf32> -> vector<12x128xf32>
    %13 = arith.addf %5, %12 : vector<12x128xf32>
    %c2 = arith.constant 2 : index
    %c0_11 = arith.constant 0 : index
    %c0_12 = arith.constant 0 : index
    %14 = vector.load %arg2[%c2, %c0_11, %c0_12] : memref<7x12x56xf32, #tpu.memory_space<vmem>>, vector<1x12x56xf32>
    %15 = vector.shape_cast %14 : vector<1x12x56xf32> to vector<12x56xf32>
    %c2_i32 = arith.constant 2 : i32
    %16 = arith.addi %arg1, %c2_i32 : i32
    %c0_13 = arith.constant 0 : index
    %17 = arith.index_cast %16 : i32 to index
    %c0_14 = arith.constant 0 : index
    %c0_15 = arith.constant 0 : index
    %18 = vector.load %arg4[%c0_13, %17, %c0_14, %c0_15] : memref<1x14x56x128xf32, #tpu.memory_space<vmem>>, vector<1x1x56x128xf32>
    %19 = vector.shape_cast %18 : vector<1x1x56x128xf32> to vector<56x128xf32>
    %cst_16 = arith.constant dense<0.000000e+00> : vector<12x128xf32>
    %20 = tpu.matmul %15, %19, %cst_16 {dimension_numbers = #tpu.dot_dimension_numbers<[1], [0], [0], [1], [0, 0, 1, 1], [], []>} : vector<12x56xf32>, vector<56x128xf32>, vector<12x128xf32> -> vector<12x128xf32>
    %21 = arith.addf %13, %20 : vector<12x128xf32>
    %c3 = arith.constant 3 : index
    %c0_17 = arith.constant 0 : index
    %c0_18 = arith.constant 0 : index
    %22 = vector.load %arg2[%c3, %c0_17, %c0_18] : memref<7x12x56xf32, #tpu.memory_space<vmem>>, vector<1x12x56xf32>
    %23 = vector.shape_cast %22 : vector<1x12x56xf32> to vector<12x56xf32>
    %c3_i32 = arith.constant 3 : i32
    %24 = arith.addi %arg1, %c3_i32 : i32
    %c0_19 = arith.constant 0 : index
    %25 = arith.index_cast %24 : i32 to index
    %c0_20 = arith.constant 0 : index
    %c0_21 = arith.constant 0 : index
    %26 = vector.load %arg4[%c0_19, %25, %c0_20, %c0_21] : memref<1x14x56x128xf32, #tpu.memory_space<vmem>>, vector<1x1x56x128xf32>
    %27 = vector.shape_cast %26 : vector<1x1x56x128xf32> to vector<56x128xf32>
    %cst_22 = arith.constant dense<0.000000e+00> : vector<12x128xf32>
    %28 = tpu.matmul %23, %27, %cst_22 {dimension_numbers = #tpu.dot_dimension_numbers<[1], [0], [0], [1], [0, 0, 1, 1], [], []>} : vector<12x56xf32>, vector<56x128xf32>, vector<12x128xf32> -> vector<12x128xf32>
    %29 = arith.addf %21, %28 : vector<12x128xf32>
    %c4 = arith.constant 4 : index
    %c0_23 = arith.constant 0 : index
    %c0_24 = arith.constant 0 : index
    %30 = vector.load %arg2[%c4, %c0_23, %c0_24] : memref<7x12x56xf32, #tpu.memory_space<vmem>>, vector<1x12x56xf32>
    %31 = vector.shape_cast %30 : vector<1x12x56xf32> to vector<12x56xf32>
    %c4_i32 = arith.constant 4 : i32
    %32 = arith.addi %arg1, %c4_i32 : i32
    %c0_25 = arith.constant 0 : index
    %33 = arith.index_cast %32 : i32 to index
    %c0_26 = arith.constant 0 : index
    %c0_27 = arith.constant 0 : index
    %34 = vector.load %arg4[%c0_25, %33, %c0_26, %c0_27] : memref<1x14x56x128xf32, #tpu.memory_space<vmem>>, vector<1x1x56x128xf32>
    %35 = vector.shape_cast %34 : vector<1x1x56x128xf32> to vector<56x128xf32>
    %cst_28 = arith.constant dense<0.000000e+00> : vector<12x128xf32>
    %36 = tpu.matmul %31, %35, %cst_28 {dimension_numbers = #tpu.dot_dimension_numbers<[1], [0], [0], [1], [0, 0, 1, 1], [], []>} : vector<12x56xf32>, vector<56x128xf32>, vector<12x128xf32> -> vector<12x128xf32>
    %37 = arith.addf %29, %36 : vector<12x128xf32>
    %c5 = arith.constant 5 : index
    %c0_29 = arith.constant 0 : index
    %c0_30 = arith.constant 0 : index
    %38 = vector.load %arg2[%c5, %c0_29, %c0_30] : memref<7x12x56xf32, #tpu.memory_space<vmem>>, vector<1x12x56xf32>
    %39 = vector.shape_cast %38 : vector<1x12x56xf32> to vector<12x56xf32>
    %c5_i32 = arith.constant 5 : i32
    %40 = arith.addi %arg1, %c5_i32 : i32
    %c0_31 = arith.constant 0 : index
    %41 = arith.index_cast %40 : i32 to index
    %c0_32 = arith.constant 0 : index
    %c0_33 = arith.constant 0 : index
    %42 = vector.load %arg4[%c0_31, %41, %c0_32, %c0_33] : memref<1x14x56x128xf32, #tpu.memory_space<vmem>>, vector<1x1x56x128xf32>
    %43 = vector.shape_cast %42 : vector<1x1x56x128xf32> to vector<56x128xf32>
    %cst_34 = arith.constant dense<0.000000e+00> : vector<12x128xf32>
    %44 = tpu.matmul %39, %43, %cst_34 {dimension_numbers = #tpu.dot_dimension_numbers<[1], [0], [0], [1], [0, 0, 1, 1], [], []>} : vector<12x56xf32>, vector<56x128xf32>, vector<12x128xf32> -> vector<12x128xf32>
    %45 = arith.addf %37, %44 : vector<12x128xf32>
    %c6 = arith.constant 6 : index
    %c0_35 = arith.constant 0 : index
    %c0_36 = arith.constant 0 : index
    %46 = vector.load %arg2[%c6, %c0_35, %c0_36] : memref<7x12x56xf32, #tpu.memory_space<vmem>>, vector<1x12x56xf32>
    %47 = vector.shape_cast %46 : vector<1x12x56xf32> to vector<12x56xf32>
    %c6_i32 = arith.constant 6 : i32
    %48 = arith.addi %arg1, %c6_i32 : i32
    %c0_37 = arith.constant 0 : index
    %49 = arith.index_cast %48 : i32 to index
    %c0_38 = arith.constant 0 : index
    %c0_39 = arith.constant 0 : index
    %50 = vector.load %arg4[%c0_37, %49, %c0_38, %c0_39] : memref<1x14x56x128xf32, #tpu.memory_space<vmem>>, vector<1x1x56x128xf32>
    %51 = vector.shape_cast %50 : vector<1x1x56x128xf32> to vector<56x128xf32>
    %cst_40 = arith.constant dense<0.000000e+00> : vector<12x128xf32>
    %52 = tpu.matmul %47, %51, %cst_40 {dimension_numbers = #tpu.dot_dimension_numbers<[1], [0], [0], [1], [0, 0, 1, 1], [], []>} : vector<12x56xf32>, vector<56x128xf32>, vector<12x128xf32> -> vector<12x128xf32>
    %53 = arith.addf %45, %52 : vector<12x128xf32>
    %c0_41 = arith.constant 0 : index
    %c0_42 = arith.constant 0 : index
    %54 = vector.load %arg3[%c0_41, %c0_42] : memref<12x1xf32, #tpu.memory_space<vmem>>, vector<12x1xf32>
    %55 = vector.broadcast %54 : vector<12x1xf32> to vector<12x128xf32>
    %56 = arith.addf %53, %55 : vector<12x128xf32>
    %cst_43 = arith.constant 0.000000e+00 : f32
    %57 = vector.broadcast %cst_43 : f32 to vector<12x128xf32>
    %58 = arith.maximumf %56, %57 : vector<12x128xf32>
    %c0_44 = arith.constant 0 : index
    %c0_45 = arith.constant 0 : index
    %c0_46 = arith.constant 0 : index
    %c0_47 = arith.constant 0 : index
    %59 = vector.load %arg5[%c0_44, %c0_45, %c0_46, %c0_47] : memref<1x1x12x128xf32, #tpu.memory_space<vmem>>, vector<1x1x12x128xf32>
    %60 = vector.shape_cast %59 : vector<1x1x12x128xf32> to vector<12x128xf32>
    %61 = vector.shape_cast %58 : vector<12x128xf32> to vector<1x1x12x128xf32>
    tpu.vector_store %arg5[%c0_44, %c0_45, %c0_46, %c0_47], %61 {strides = array<i32>} : memref<1x1x12x128xf32, #tpu.memory_space<vmem>>, vector<1x1x12x128xf32>,
    return
  }
  func.func @transform_0(%arg0: i32, %arg1: i32) -> (i32, i32, i32) {
    %c0_i32 = arith.constant 0 : i32
    %c0_i32_0 = arith.constant 0 : i32
    %c0_i32_1 = arith.constant 0 : i32
    %c0_i32_2 = arith.constant 0 : i32
    return %c0_i32, %c0_i32_0, %c0_i32_1 : i32, i32, i32
  }
  func.func @transform_1(%arg0: i32, %arg1: i32) -> (i32, i32) {
    %c0_i32 = arith.constant 0 : i32
    %c0_i32_0 = arith.constant 0 : i32
    %c0_i32_1 = arith.constant 0 : i32
    return %c0_i32, %c0_i32_0 : i32, i32
  }
  func.func @transform_2(%arg0: i32, %arg1: i32) -> (i32, i32, i32, i32) {
    %c0_i32 = arith.constant 0 : i32
    %c0_i32_0 = arith.constant 0 : i32
    %c0_i32_1 = arith.constant 0 : i32
    %c0_i32_2 = arith.constant 0 : i32
    return %arg0, %c0_i32, %c0_i32_0, %c0_i32_1 : i32, i32, i32, i32
  }
  func.func @transform_3(%arg0: i32, %arg1: i32) -> (i32, i32, i32, i32) {
    %c0_i32 = arith.constant 0 : i32
    %c0_i32_0 = arith.constant 0 : i32
    %c0_i32_1 = arith.constant 0 : i32
    return %arg0, %arg1, %c0_i32, %c0_i32_0 : i32, i32, i32, i32
  }
}

</mosaic_0001>

<bundles_post_ra>
// kernel: _spectral_conv_jit.1
= control target key start
LH: loop header
LB: loop body
LE: loop exit
PB: predicated region body
PF: predicated region fallthrough
CT: control target
= control target key end

     0   :  { %s1196_s12 = smov 0   ;;  %s1198_s13 = smov 0   ;;  %s1422_s0 = inlined_call_operand.vmem [shape: f32[7,12,56], index: 0, kind: input, shape index: {}]   ;;  %s1423_s1 = inlined_call_operand.vmem [shape: f32[12,1], index: 1, kind: input, shape index: {}]   ;;  %s1424_s2 = inlined_call_operand.vmem [shape: f32[2,14,8,256], index: 2, kind: input, shape index: {}]   ;;  %s1425_s3 = inlined_call_operand.vmem [shape: f32[2,8,12,128], index: 3, kind: output, shape index: {}]  }
   0x1   :  { %s1200_s14 = smov 0   ;;  %s1202_s15 = smov 0  }
   0x2   :  { %s1204_s16 = smov 0  }
   0x3 LB: > { %s22_s17 = sadd.s32 1, %s1159_s14  ;;  %s25_s18 = sadd.s32 1, %s1163_s15  ;;  %s1167_s16 = sphi %s1204_s16, %s13_s16   ;;  %s1163_s15 = sphi %s1202_s15, %s1429_s15   ;;  %s1159_s14 = sphi %s1200_s14, %s1428_s14   ;;  %s1155_s13 = sphi %s1198_s13, %s1427_s13   ;;  %s1151_s12 = sphi %s1196_s12, %s1426_s12  }
   0x4   : > { %p23_p0 = scmp.ge.s32.totalorder %s22_s17, 8  ;;  %p826_p1 = scmp.ge.s32.totalorder %s1167_s16, 1 }
   0x5   : > { %p151_p2 = scmp.lt.s32.totalorder %s1167_s16, 17 }
   0x6   : > { %s1431_s17 = smov (%p23_p0, %s22_s17), 0  ;;  %s1433_s18 = smov (!%p23_p0, %s25_s18), %s1163_s15 }
   0x7   : > { %p152_p3 = pnand %p826_p1, %p151_p2  ;;  %p27_p4 = scmp.ge.s32.totalorder %s1433_s18, 2 }
   0x8   : > { %p179_p5 = scmp.lt.s32.totalorder (!%p152_p3), %s1155_s13, 1  ;;  %s861_s20 = sshll.u32 (!%p152_p3), %s1151_s12, 4 }
   0x9   : > { %s1435_s18 = smov (%p27_p4, %s1433_s18), 0  ;;  %155 = sbr.rel (%p152_p3) target bundleno = 391 (0x187), region = 32 }
   0xa   : > { %s1169_s25 = smov (!%p152_p3), 127   ;;  %s1170_s26 = smov (!%p152_p3), 126  }
   0xb   : > { %s1171_s27 = smov (!%p152_p3), 125   ;;  %s1172_s28 = smov (!%p152_p3), 122  }
   0xc   : > { %s1173_s29 = smov (!%p152_p3), 124   ;;  %s1174_s30 = smov (!%p152_p3), 123  }
   0xd   : > { %p186_p6 = scmp.lt.s32.totalorder (!%p152_p3), %s1151_s12, 7 }
   0xe   : > { %s1437_s13 = smov (!%p179_p5, %s1155_s13), 1  ;;  %vm257_vm0 = vcmask 1039360   ;;  %vm362_vm1 = vcmask 1031168   ;;  %vm439_vm2 = vcmask 1022976   ;;  %vm516_vm3 = vcmask 1014784  }
   0xf   : > { %s869_s19 = smul.u32 224, %s1437_s13  ;;  %vm670_vm4 = vcmask 998400   ;;  %vm272_vm5 = vcmask 457728   ;;  %vm593_vm6 = vcmask 1006592   ;;  %s1439_s12 = smov (!%p186_p6, %s1151_s12), 7 }
  0x11   : > { %s183_s23 = scalar_lea.vmem %s1424_s2, %s869_s19 }
  0x12   : > { %s1235_s24 = scalar_lea.vmem %s183_s23, %s861_s20  ;;  %s828_s23 = sshll.u32 %s1439_s12, 1 }
  0x13   : > { %v198_v0 = vld [vmem:[%s1235_s24 + $0x20] sm:$0xff]  ;;  %v207_v1 = vld [vmem:[%s1235_s24 + $0x28] sm:$0xff]  ;;  %v199_v7 = vld [vmem:[%s1235_s24 + $0x30] sm:$0xff] }
  0x14   : > { %v196_v2 = vld [vmem:[%s1235_s24] sm:$0xff]  ;;  %v1240_v3 = vpack.i.bf16 %v207_v1, %v198_v0  ;;  %v205_v4 = vld [vmem:[%s1235_s24 + $0x8] sm:$0xff]  ;;  %v208_v8 = vld [vmem:[%s1235_s24 + $0x38] sm:$0xff] }
  0x15   : > { %v1243_v5 = vpack.i.bf16 %v205_v4, %v196_v2  ;;  %v202_v6 = vld [vmem:[%s1235_s24 + $0x60] sm:$0xff]  ;;  %v201_v10 = vld [vmem:[%s1235_s24 + $0x50] sm:$0xff]  ;;  %v209_v11 = vld [vmem:[%s1235_s24 + $0x48] sm:$0xff]  ;;  %v932_v15 = vpack.i.bf16 %v208_v8, %v199_v7  ;;  %v982_v25 = vpack.i.bf16 %v198_v0, %v208_v8 }
  0x16   : > { %928 = vrot.lane.b32.xlu1 %v1240_v3, %s1169_s25  ;;  %317 = vmatpush.msra.mxu1 %v202_v6  ;;  %v200_v9 = vld [vmem:[%s1235_s24 + $0x40] sm:$0xff]  ;;  %v197_v12 = vld [vmem:[%s1235_s24 + $0x10] sm:$0xff]  ;;  %v206_v13 = vld [vmem:[%s1235_s24 + $0x18] sm:$0xff]  ;;  %v972_v24 = vpack.i.bf16 %v199_v7, %v209_v11 }
  0x17   : > { %918 = vrot.lane.b32.xlu0 %v1243_v5, %s1169_s25  ;;  %v937_v14 = vpack.i.bf16 %v209_v11, %v200_v9  ;;  %v922_v16 = vpack.i.bf16 %v206_v13, %v197_v12  ;;  %v210_v17 = vld [vmem:[%s1235_s24 + $0x58] sm:$0xff]  ;;  %v211_v19 = vld [vmem:[%s1235_s24 + $0x68] sm:$0xff]  ;;  %v957_v21 = vpack.i.bf16 %v202_v6, %v197_v12  ;;  %v992_v26 = vpack.i.bf16 %v206_v13, %v207_v1  ;;  %s829_s24 = sshll.u32 %s1437_s13, 4 }
  0x18   : > { %318 = vmatpush.msra.mxu1 %v201_v10  ;;  %v942_v18 = vpack.i.bf16 %v210_v17, %v201_v10  ;;  %v947_v20 = vpack.i.bf16 %v211_v19, %v202_v6  ;;  %v967_v22 = vpack.i.bf16 %v200_v9, %v210_v17  ;;  %v962_v23 = vpack.i.bf16 %v201_v10, %v211_v19 }
  0x19   : > { %938 = vrot.lane.b32.xlu2 %v937_v14, %s1169_s25 }
  0x1a   : > { %319 = vmatpush.msra.mxu1 %v200_v9 }
  0x1c   : > { %320 = vmatpush.msra.mxu1 %v199_v7 }
  0x1e   : > { %933 = vrot.lane.b32.xlu1 %v932_v15, %s1169_s25  ;;  %321 = vmatpush.msra.mxu1 %v198_v0 }
  0x1f   : > { %923 = vrot.lane.b32.xlu0 %v922_v16, %s1169_s25 }
  0x20   : > { %322 = vmatpush.msra.mxu1 %v197_v12 }
  0x21   : > { %943 = vrot.lane.b32.xlu2 %v942_v18, %s1169_s25 }
  0x22   : > { %323 = vmatpush.msra.mxu1 %v196_v2 }
  0x26   : > { %953 = vrot.lane.b32.xlu1 %v1243_v5, %s1170_s26 }
  0x27   : > { %948 = vrot.lane.b32.xlu0 %v947_v20, %s1169_s25  ;;  %s190_s25 = sadd.s32 %s829_s24, %s828_s23 }
  0x29   : > { %958 = vrot.lane.b32.xlu2 %v957_v21, %s1170_s26 }
  0x2e   : > { %968 = vrot.lane.b32.xlu1 %v967_v22, %s1170_s26 }
  0x2f   : > { %963 = vrot.lane.b32.xlu0 %v962_v23, %s1170_s26 }
  0x31   : > { %973 = vrot.lane.b32.xlu2 %v972_v24, %s1170_s26 }
  0x36   : > { %983 = vrot.lane.b32.xlu1 %v982_v25, %s1170_s26 }
  0x37   : > { %978 = vrot.lane.b32.xlu0 %v947_v20, %s1171_s27 }
  0x39   : > { %988 = vrot.lane.b32.xlu2 %v942_v18, %s1171_s27 }
  0x3e   : > { %998 = vrot.lane.b32.xlu1 %v937_v14, %s1171_s27 }
  0x3f   : > { %993 = vrot.lane.b32.xlu0 %v992_v26, %s1170_s26  ;;  %s830_s26 = sshll.u32 %s190_s25, 3 }
  0x41   : > { %1003 = vrot.lane.b32.xlu2 %v932_v15, %s1171_s27 }
  0x46   : > { %1013 = vrot.lane.b32.xlu1 %v922_v16, %s1171_s27 }
  0x47   : > { %1008 = vrot.lane.b32.xlu0 %v1240_v3, %s1171_s27 }
  0x49   : > { %1018 = vrot.lane.b32.xlu2 %v1243_v5, %s1171_s27 }
  0x4e   : > { %1028 = vrot.lane.b32.xlu1 %v942_v18, %s1172_s28 }
  0x4f   : > { %1023 = vrot.lane.b32.xlu0 %v947_v20, %s1172_s28 }
  0x51   : > { %1033 = vrot.lane.b32.xlu2 %v947_v20, %s1173_s29 }
  0x56   : > { %1043 = vrot.lane.b32.xlu1 %v937_v14, %s1172_s28 }
  0x57   : > { %1038 = vrot.lane.b32.xlu0 %v947_v20, %s1174_s30 }
  0x59   : > { %1048 = vrot.lane.b32.xlu2 %v942_v18, %s1173_s29 }
  0x5e   : > { %1058 = vrot.lane.b32.xlu1 %v932_v15, %s1172_s28 }
  0x5f   : > { %1053 = vrot.lane.b32.xlu0 %v942_v18, %s1174_s30 }
  0x61   : > { %1063 = vrot.lane.b32.xlu2 %v937_v14, %s1173_s29 }
  0x66   : > { %1073 = vrot.lane.b32.xlu1 %v1240_v3, %s1172_s28 }
  0x67   : > { %1068 = vrot.lane.b32.xlu0 %v937_v14, %s1174_s30 }
  0x69   : > { %1078 = vrot.lane.b32.xlu2 %v932_v15, %s1173_s29 }
  0x6e   : > { %1088 = vrot.lane.b32.xlu1 %v922_v16, %s1172_s28 }
  0x6f   : > { %1083 = vrot.lane.b32.xlu0 %v932_v15, %s1174_s30 }
  0x71   : > { %1093 = vrot.lane.b32.xlu2 %v1240_v3, %s1173_s29 }
  0x73   : > { %v939_v27 = vpop.permute.xlu2 %938 }
  0x74   : > { %v941_v42 = vunpack.i.h.bf16 %v939_v27  ;;  %v940_v43 = vunpack.i.l.bf16 %v939_v27 }
  0x76   : > { %1103 = vrot.lane.b32.xlu1 %v1243_v5, %s1172_s28  ;;  %v262_v52 = vsel %vm257_vm0, %v940_v43, %v941_v42 }
  0x77   : > { %1098 = vrot.lane.b32.xlu0 %v1240_v3, %s1174_s30 }
  0x79   : > { %1108 = vrot.lane.b32.xlu2 %v922_v16, %s1173_s29 }
  0x7b   : > { %v944_v28 = vpop.permute.xlu2 %943 }
  0x7c   : > { %v946_v38 = vunpack.i.h.bf16 %v944_v28  ;;  %v945_v39 = vunpack.i.l.bf16 %v944_v28 }
  0x7e   : > { %1118 = vrot.lane.b32.xlu1 %v1243_v5, %s1173_s29  ;;  %v263_v48 = vsel %vm257_vm0, %v945_v39, %v946_v38  ;;  %s192_s29 = scalar_lea.vmem %s1425_s3, %s830_s26 }
  0x7f   : > { %1113 = vrot.lane.b32.xlu0 %v922_v16, %s1174_s30 }
  0x81   : > { %1123 = vrot.lane.b32.xlu2 %v1243_v5, %s1174_s30 }
  0x83   : > { %v1273_v29 = vpop.permute.xlu2 %958 }
  0x84   : > { %v961_v55 = vunpack.i.h.bf16 %v1273_v29  ;;  %v960_v38 = vunpack.i.l.bf16 %v1273_v29 }
  0x88   : > { %v929_v30 = vpop.permute.xlu1 %928 }
  0x89   : > { %v919_v31 = vpop.permute.xlu0 %918  ;;  %v931_v49 = vunpack.i.h.bf16 %v929_v30  ;;  %v930_v50 = vunpack.i.l.bf16 %v929_v30 }
  0x8a   : > { %v921_v61 = vunpack.i.h.bf16 %v919_v31  ;;  %v920_v62 = vunpack.i.l.bf16 %v919_v31 }
  0x8b   : > { %v1275_v32 = vpop.permute.xlu2 %973  ;;  %v260_v1 = vsel %vm257_vm0, %v930_v50, %v931_v49 }
  0x8c   : > { %v975_v0 = vunpack.i.l.bf16 %v1275_v32  ;;  %v258_v7 = vsel %vm257_vm0, %v920_v62, %v921_v61  ;;  %v976_v11 = vunpack.i.h.bf16 %v1275_v32 }
  0x90   : > { %v934_v33 = vpop.permute.xlu1 %933 }
  0x91   : > { %v924_v34 = vpop.permute.xlu0 %923  ;;  %v936_v46 = vunpack.i.h.bf16 %v934_v33  ;;  %v935_v47 = vunpack.i.l.bf16 %v934_v33 }
  0x92   : > { %v926_v53 = vunpack.i.h.bf16 %v924_v34  ;;  %v925_v54 = vunpack.i.l.bf16 %v924_v34 }
  0x93   : > { %v1277_v35 = vpop.permute.xlu2 %988  ;;  %v261_v60 = vsel %vm257_vm0, %v935_v47, %v936_v46 }
  0x94   : > { %v259_v4 = vsel %vm257_vm0, %v925_v54, %v926_v53  ;;  %v991_v9 = vunpack.i.h.bf16 %v1277_v35  ;;  %v990_v10 = vunpack.i.l.bf16 %v1277_v35 }
  0x96   : > { %v445_v18 = vsel %vm439_vm2, %v990_v10, %v991_v9  ;;  %v203_v9 = vld [vmem:[%s1422_s0] sm:$0xff] }
  0x97   : > { %837 = vmatmul.msk.f32.vlgmr.msra.gmra.mxu1 %vm272_vm5, %v203_v9 }
  0x98   : > { %v1279_v36 = vpop.permute.xlu1 %953 }
  0x99   : > { %v949_v37 = vpop.permute.xlu0 %948  ;;  %v956_v35 = vunpack.i.h.bf16 %v1279_v36 }
  0x9a   : > { %v951_v40 = vunpack.i.h.bf16 %v949_v37  ;;  %v950_v41 = vunpack.i.l.bf16 %v949_v37  ;;  %v955_v37 = vunpack.i.l.bf16 %v1279_v36 }
  0x9b   : > { %v1282_v45 = vpop.permute.xlu2 %1003 }
  0x9c   : > { %v264_v44 = vsel %vm257_vm0, %v950_v41, %v951_v40  ;;  %v1006_v22 = vunpack.i.h.bf16 %v1282_v45  ;;  %v1005_v23 = vunpack.i.l.bf16 %v1282_v45  ;;  %v363_v46 = vsel %vm362_vm1, %v955_v37, %v956_v35 }
  0x9d   : > { %288 = vmatpush.msra.mxu0 %v264_v44 }
  0x9e   : > { %v443_v34 = vsel %vm439_vm2, %v1005_v23, %v1006_v22  ;;  %v834_v23 = vld [vmem:[%s1422_s0 + $0x18] sm:$0xf] }
  0x9f   : > { %289 = vmatpush.msra.mxu0 %v263_v48 }
  0xa0   : > { %v969_v51 = vpop.permute.xlu1 %968 }
  0xa1   : > { %v964_v56 = vpop.permute.xlu0 %963  ;;  %290 = vmatpush.msra.mxu0 %v262_v52  ;;  %v970_v57 = vunpack.i.l.bf16 %v969_v51  ;;  %v971_v63 = vunpack.i.h.bf16 %v969_v51 }
  0xa2   : > { %v966_v58 = vunpack.i.h.bf16 %v964_v56  ;;  %v965_v59 = vunpack.i.l.bf16 %v964_v56 }
  0xa3   : > { %291 = vmatpush.msra.mxu0 %v261_v60  ;;  %v1291_v3 = vpop.permute.xlu2 %1018  ;;  %v367_v8 = vsel %vm362_vm1, %v971_v63, %v975_v0 }
  0xa4   : > { %v369_v2 = vsel %vm362_vm1, %v961_v55, %v965_v59  ;;  %v368_v5 = vsel %vm362_vm1, %v966_v58, %v970_v57  ;;  %v1021_v50 = vunpack.i.h.bf16 %v1291_v3  ;;  %v1020_v51 = vunpack.i.l.bf16 %v1291_v3 }
  0xa5   : > { %292 = vmatpush.msra.mxu0 %v260_v1  ;;  %392 = vmatpush.msra.mxu2 %v369_v2  ;;  %v839_v1 = vld [vmem:[%s1422_s0 + $0x20] sm:$0xff] }
  0xa6   : > { %v440_v59 = vsel %vm439_vm2, %v1020_v51, %v1021_v50 }
  0xa7   : > { %293 = vmatpush.msra.mxu0 %v259_v4  ;;  %393 = vmatpush.msra.mxu2 %v368_v5 }
  0xa8   : > { %v984_v6 = vpop.permute.xlu1 %983 }
  0xa9   : > { %v985_v12 = vunpack.i.l.bf16 %v984_v6  ;;  %v979_v13 = vpop.permute.xlu0 %978  ;;  %294 = vmatpush.msra.mxu0 %v258_v7  ;;  %394 = vmatpush.msra.mxu2 %v367_v8  ;;  %v986_v30 = vunpack.i.h.bf16 %v984_v6  ;;  %v833_v7 = vld [vmem:[%s1422_s0 + $0x10] sm:$0xff] }
  0xaa   : > { %v981_v14 = vunpack.i.h.bf16 %v979_v13  ;;  %v980_v15 = vunpack.i.l.bf16 %v979_v13  ;;  %v843_v8 = vld [vmem:[%s1422_s0 + $0x30] sm:$0xff]  ;;  %835 = vmatmul.msk.f32.vlgmr.msra.gmra.mxu0 %vm272_vm5, %v833_v7 }
  0xab   : > { %v366_v16 = vsel %vm362_vm1, %v976_v11, %v985_v12  ;;  %v1034_v19 = vpop.permute.xlu2 %1033 }
  0xac   : > { %395 = vmatpush.msra.mxu2 %v366_v16  ;;  %v446_v17 = vsel %vm439_vm2, %v980_v15, %v981_v14  ;;  %v1036_v20 = vunpack.i.h.bf16 %v1034_v19  ;;  %v1035_v21 = vunpack.i.l.bf16 %v1034_v19 }
  0xad   : > { %469 = vmatpush.msra.mxu3 %v446_v17  ;;  %v840_v17 = vld [vmem:[%s1422_s0 + $0x28] sm:$0xf] }
  0xae   : > { %v523_v24 = vsel %vm516_vm3, %v1035_v21, %v1036_v20 }
  0xaf   : > { %470 = vmatpush.msra.mxu3 %v445_v18  ;;  %546 = vmatpush.msrb.mxu0 %v523_v24 }
  0xb0   : > { %v999_v25 = vpop.permute.xlu1 %998 }
  0xb1   : > { %v1001_v26 = vunpack.i.h.bf16 %v999_v25  ;;  %v1000_v27 = vunpack.i.l.bf16 %v999_v25  ;;  %v994_v28 = vpop.permute.xlu0 %993  ;;  %v204_v25 = vld [vmem:[%s1422_s0 + $0x8] sm:$0xf] }
  0xb2   : > { %v996_v31 = vunpack.i.h.bf16 %v994_v28  ;;  %v995_v32 = vunpack.i.l.bf16 %v994_v28  ;;  %836 = vmatmul.msk.f32.gmra.mxu0 %vm272_vm5, %v834_v23  ;;  %838 = vmatmul.msk.f32.gmra.mxu1 %vm272_vm5, %v204_v25 }
  0xb3   : > { %v444_v33 = vsel %vm439_vm2, %v1000_v27, %v1001_v26  ;;  %v1049_v40 = vpop.permute.xlu2 %1048 }
  0xb4   : > { %v365_v39 = vsel %vm362_vm1, %v986_v30, %v995_v32  ;;  %471 = vmatpush.msra.mxu3 %v444_v33  ;;  %v1051_v41 = vunpack.i.h.bf16 %v1049_v40  ;;  %v1050_v42 = vunpack.i.l.bf16 %v1049_v40  ;;  %v364_v43 = vsel %vm362_vm1, %v960_v38, %v996_v31 }
  0xb5   : > { %396 = vmatpush.msra.mxu2 %v365_v39 }
  0xb6   : > { %472 = vmatpush.msra.mxu3 %v443_v34  ;;  %v522_v44 = vsel %vm516_vm3, %v1050_v42, %v1051_v41 }
  0xb7   : > { %397 = vmatpush.msra.mxu2 %v364_v43  ;;  %547 = vmatpush.msrb.mxu0 %v522_v44 }
  0xb8   : > { %v1014_v45 = vpop.permute.xlu1 %1013 }
  0xb9   : > { %v1016_v36 = vunpack.i.h.bf16 %v1014_v45  ;;  %v1015_v47 = vunpack.i.l.bf16 %v1014_v45  ;;  %v1009_v29 = vpop.permute.xlu0 %1008  ;;  %398 = vmatpush.msra.mxu2 %v363_v46 }
  0xba   : > { %v1011_v48 = vunpack.i.h.bf16 %v1009_v29  ;;  %v1010_v49 = vunpack.i.l.bf16 %v1009_v29  ;;  %841 = vmatmul.msk.f32.vlgmr.msra.gmra.mxu2 %vm272_vm5, %v839_v1 }
  0xbb   : > { %v441_v53 = vsel %vm439_vm2, %v1015_v47, %v1016_v36  ;;  %v1064_v54 = vpop.permute.xlu2 %1063 }
  0xbc   : > { %v442_v52 = vsel %vm439_vm2, %v1010_v49, %v1011_v48  ;;  %v1066_v55 = vunpack.i.h.bf16 %v1064_v54  ;;  %v1065_v56 = vunpack.i.l.bf16 %v1064_v54  ;;  %v716_v48 = vld [vmem:[%s1423_s1] sm:$0xff]  ;;  %v717_v49 = vld [vmem:[%s1423_s1 + $0x8] sm:$0xf] }
  0xbd   : > { %473 = vmatpush.msra.mxu3 %v442_v52 }
  0xbe   : > { %v521_v57 = vsel %vm516_vm3, %v1065_v56, %v1066_v55 }
  0xbf   : > { %474 = vmatpush.msra.mxu3 %v441_v53  ;;  %548 = vmatpush.msrb.mxu0 %v521_v57  ;;  %v1175_v53 = vmov 0  }
  0xc0   : > { %v1029_v58 = vpop.permute.xlu1 %1028  ;;  %1127 = vset.pattern.permute.xlu0 %v1175_v53  ;;  %1128 = vset.pattern.permute.xlu1 %v1175_v53 }
  0xc1   : > { %v1031_v60 = vunpack.i.h.bf16 %v1029_v58  ;;  %v1030_v61 = vunpack.i.l.bf16 %v1029_v58  ;;  %v1024_v62 = vpop.permute.xlu0 %1023  ;;  %475 = vmatpush.msra.mxu3 %v440_v59  ;;  %720 = vperm.xlu0 %1127, %v716_v48  }
  0xc2   : > { %v1026_v63 = vunpack.i.h.bf16 %v1024_v62  ;;  %v1025_v0 = vunpack.i.l.bf16 %v1024_v62  ;;  %845 = vmatmul.msk.f32.vlgmr.msra.gmra.mxu3 %vm272_vm5, %v843_v8  ;;  %842 = vmatmul.msk.f32.gmra.mxu2 %vm272_vm5, %v840_v17 }
  0xc3   : > { %862 = vmatpush.msrb.mxu3 %v523_v24  ;;  %v676_v3 = vsel %vm670_vm4, %v1030_v61, %v1031_v60  ;;  %v1079_v4 = vpop.permute.xlu2 %1078  ;;  %v844_v24 = vld [vmem:[%s1422_s0 + $0x38] sm:$0xf]  ;;  %725 = vperm.xlu1 %1128, %v717_v49  }
  0xc4   : > { %v677_v2 = vsel %vm670_vm4, %v1025_v0, %v1026_v63  ;;  %v1081_v5 = vunpack.i.h.bf16 %v1079_v4  ;;  %v1080_v6 = vunpack.i.l.bf16 %v1079_v4  ;;  %v855_v0 = vld [vmem:[%s1422_s0 + $0x60] sm:$0xff] }
  0xc5   : > { %863 = vmatpush.msrb.mxu3 %v522_v44  ;;  %700 = vmatpush.msrb.mxu2 %v677_v2 }
  0xc6   : > { %v520_v10 = vsel %vm516_vm3, %v1080_v6, %v1081_v5 }
  0xc7   : > { %864 = vmatpush.msrb.mxu3 %v521_v57  ;;  %701 = vmatpush.msrb.mxu2 %v676_v3 }
  0xc8   : > { %v1044_v11 = vpop.permute.xlu1 %1043  ;;  %549 = vmatpush.msrb.mxu0 %v520_v10 }
  0xc9   : > { %865 = vmatpush.msrb.mxu3 %v520_v10  ;;  %v1046_v12 = vunpack.i.h.bf16 %v1044_v11  ;;  %v1045_v13 = vunpack.i.l.bf16 %v1044_v11  ;;  %v1039_v14 = vpop.permute.xlu0 %1038 }
  0xca   : > { %v1041_v15 = vunpack.i.h.bf16 %v1039_v14  ;;  %v1040_v16 = vunpack.i.l.bf16 %v1039_v14  ;;  %846 = vmatmul.msk.f32.gmra.mxu3 %vm272_vm5, %v844_v24  ;;  %v848_v14 = vld [vmem:[%s1422_s0 + $0x48] sm:$0xf] }
  0xcb   : > { %v675_v18 = vsel %vm670_vm4, %v1045_v13, %v1046_v12  ;;  %v1094_v20 = vpop.permute.xlu2 %1093  ;;  %v847_v12 = vld [vmem:[%s1422_s0 + $0x40] sm:$0xff] }
  0xcc   : > { %v600_v19 = vsel %vm593_vm6, %v1040_v16, %v1041_v15  ;;  %702 = vmatpush.msrb.mxu2 %v675_v18  ;;  %v1096_v21 = vunpack.i.h.bf16 %v1094_v20  ;;  %v1095_v22 = vunpack.i.l.bf16 %v1094_v20  ;;  %v856_v15 = vld [vmem:[%s1422_s0 + $0x68] sm:$0xf]  ;;  %v851_v18 = vld [vmem:[%s1422_s0 + $0x50] sm:$0xff] }
  0xcd   : > { %623 = vmatpush.msrb.mxu1 %v600_v19  ;;  %v852_v19 = vld [vmem:[%s1422_s0 + $0x58] sm:$0xf] }
  0xce   : > { %v519_v26 = vsel %vm516_vm3, %v1095_v22, %v1096_v21 }
  0xcf   : > { %550 = vmatpush.msrb.mxu0 %v519_v26  ;;  %866 = vmatpush.msrb.mxu3 %v519_v26 }
  0xd0   : > { %v1059_v27 = vpop.permute.xlu1 %1058 }
  0xd1   : > { %v1061_v28 = vunpack.i.h.bf16 %v1059_v27  ;;  %v1060_v30 = vunpack.i.l.bf16 %v1059_v27  ;;  %v1054_v31 = vpop.permute.xlu0 %1053 }
  0xd2   : > { %v1056_v32 = vunpack.i.h.bf16 %v1054_v31  ;;  %v1055_v33 = vunpack.i.l.bf16 %v1054_v31 }
  0xd3   : > { %v674_v34 = vsel %vm670_vm4, %v1060_v30, %v1061_v28  ;;  %v1109_v37 = vpop.permute.xlu2 %1108 }
  0xd4   : > { %v599_v35 = vsel %vm593_vm6, %v1055_v33, %v1056_v32  ;;  %703 = vmatpush.msrb.mxu2 %v674_v34  ;;  %v1111_v38 = vunpack.i.h.bf16 %v1109_v37  ;;  %v1110_v39 = vunpack.i.l.bf16 %v1109_v37 }
  0xd5   : > { %624 = vmatpush.msrb.mxu1 %v599_v35 }
  0xd6   : > { %v518_v40 = vsel %vm516_vm3, %v1110_v39, %v1111_v38 }
  0xd7   : > { %551 = vmatpush.msrb.mxu0 %v518_v40  ;;  %867 = vmatpush.msrb.mxu3 %v518_v40 }
  0xd8   : > { %v1074_v41 = vpop.permute.xlu1 %1073 }
  0xd9   : > { %v1076_v42 = vunpack.i.h.bf16 %v1074_v41  ;;  %v1075_v43 = vunpack.i.l.bf16 %v1074_v41  ;;  %v1069_v44 = vpop.permute.xlu0 %1068 }
  0xda   : > { %v1071_v45 = vunpack.i.h.bf16 %v1069_v44  ;;  %v1070_v46 = vunpack.i.l.bf16 %v1069_v44 }
  0xdb   : > { %v673_v36 = vsel %vm670_vm4, %v1075_v43, %v1076_v42  ;;  %v1124_v3 = vpop.permute.xlu2 %1123 }
  0xdc   : > { %v598_v47 = vsel %vm593_vm6, %v1070_v46, %v1071_v45  ;;  %704 = vmatpush.msrb.mxu2 %v673_v36  ;;  %v1126_v5 = vunpack.i.h.bf16 %v1124_v3  ;;  %v1125_v6 = vunpack.i.l.bf16 %v1124_v3 }
  0xdd   : > { %625 = vmatpush.msrb.mxu1 %v598_v47 }
  0xde   : > { %v594_v17 = vsel %vm593_vm6, %v1125_v6, %v1126_v5 }
  0xe0   : > { %v1089_v29 = vpop.permute.xlu1 %1088 }
  0xe1   : > { %v1091_v50 = vunpack.i.h.bf16 %v1089_v29  ;;  %v1090_v51 = vunpack.i.l.bf16 %v1089_v29  ;;  %v1084_v52 = vpop.permute.xlu0 %1083 }
  0xe2   : > { %v1086_v54 = vunpack.i.h.bf16 %v1084_v52  ;;  %v1085_v55 = vunpack.i.l.bf16 %v1084_v52 }
  0xe3   : > { %v672_v56 = vsel %vm670_vm4, %v1090_v51, %v1091_v50 }
  0xe4   : > { %v597_v57 = vsel %vm593_vm6, %v1085_v55, %v1086_v54  ;;  %705 = vmatpush.msrb.mxu2 %v672_v56 }
  0xe5   : > { %626 = vmatpush.msrb.mxu1 %v597_v57 }
  0xe8   : > { %v1104_v58 = vpop.permute.xlu1 %1103 }
  0xe9   : > { %v1106_v59 = vunpack.i.h.bf16 %v1104_v58  ;;  %v1105_v60 = vunpack.i.l.bf16 %v1104_v58  ;;  %v1099_v61 = vpop.permute.xlu0 %1098 }
  0xea   : > { %v1101_v62 = vunpack.i.h.bf16 %v1099_v61  ;;  %v1100_v63 = vunpack.i.l.bf16 %v1099_v61 }
  0xeb   : > { %v671_v1 = vsel %vm670_vm4, %v1105_v60, %v1106_v59 }
  0xec   : > { %v596_v2 = vsel %vm593_vm6, %v1100_v63, %v1101_v62  ;;  %706 = vmatpush.msrb.mxu2 %v671_v1 }
  0xed   : > { %627 = vmatpush.msrb.mxu1 %v596_v2  ;;  %857 = vmatmul.msk.f32.vlgmr.msrb.gmra.mxu2 %vm272_vm5, %v855_v0 }
  0xf0   : > { %v1119_v4 = vpop.permute.xlu1 %1118 }
  0xf1   : > { %v1121_v7 = vunpack.i.h.bf16 %v1119_v4  ;;  %v1120_v8 = vunpack.i.l.bf16 %v1119_v4  ;;  %v1114_v9 = vpop.permute.xlu0 %1113 }
  0xf2   : > { %v1116_v10 = vunpack.i.h.bf16 %v1114_v9  ;;  %v1115_v11 = vunpack.i.l.bf16 %v1114_v9 }
  0xf3   : > { %v517_v13 = vsel %vm516_vm3, %v1120_v8, %v1121_v7 }
  0xf4   : > { %552 = vmatpush.msrb.mxu0 %v517_v13  ;;  %868 = vmatpush.msrb.mxu3 %v517_v13  ;;  %v595_v16 = vsel %vm593_vm6, %v1115_v11, %v1116_v10 }
  0xf5   : > { %628 = vmatpush.msrb.mxu1 %v595_v16  ;;  %849 = vmatmul.msk.f32.vlgmr.msrb.gmra.mxu0 %vm272_vm5, %v847_v12 }
  0xf6   : > { %850 = vmatmul.msk.f32.vlgmr.msrb.gmra.mxu3 %vm272_vm5, %v848_v14  ;;  %858 = vmatmul.msk.f32.gmra.mxu2 %vm272_vm5, %v856_v15 }
  0xf7   : > { %629 = vmatpush.msrb.mxu1 %v594_v17 }
  0xf8   : > { %853 = vmatmul.msk.f32.vlgmr.msrb.gmra.mxu1 %vm272_vm5, %v851_v18 }
 0x100   : > { %854 = vmatmul.msk.f32.gmra.mxu1 %vm272_vm5, %v852_v19 }
 0x114   : > { %v325_v22 = vpop.f32.mrf.mxu1 }
 0x127   : > { %v296_v20 = vpop.f32.mrf.mxu0 }
 0x128   : > { %v326_v25 = vadd.f32 %v325_v22, %v296_v20 }
 0x12f   : > { %v299_v24 = vpop.f32.mrf.mxu0  ;;  %v328_v27 = vpop.f32.mrf.mxu1 }
 0x130   : > { %v329_v32 = vadd.f32 %v328_v27, %v299_v24 }
 0x133   : > { %v721_v40 = vpop.permute.xlu0 %720 }
 0x135   : > { %v726_v48 = vpop.permute.xlu1 %725 }
 0x13d   : > { %v400_v21 = vpop.f32.mrf.mxu2 }
 0x13e   : > { %v406_v28 = vadd.f32 %v400_v21, %v326_v25 }
 0x145   : > { %v477_v23 = vpop.f32.mrf.mxu3  ;;  %v403_v26 = vpop.f32.mrf.mxu2 }
 0x146   : > { %v483_v31 = vadd.f32 %v477_v23, %v406_v28  ;;  %v407_v38 = vadd.f32 %v403_v26, %v329_v32 }
 0x14d   : > { %v480_v30 = vpop.f32.mrf.mxu3 }
 0x14e   : > { %v484_v43 = vadd.f32 %v480_v30, %v407_v38 }
 0x170   : > { %v708_v35 = vpop.f32.mrf.mxu2 }
 0x172   : > { %v554_v33 = vpop.f32.mrf.mxu0 }
 0x173   : > { %v560_v34 = vadd.f32 %v554_v33, %v483_v31 }
 0x175   : > { %v631_v37 = vpop.f32.mrf.mxu1 }
 0x176   : > { %v637_v39 = vadd.f32 %v631_v37, %v560_v34 }
 0x178   : > { %v714_v41 = vadd.f32 %v708_v35, %v637_v39 }
 0x179   : > { %v557_v42 = vpop.f32.mrf.mxu3  ;;  %v711_v47 = vpop.f32.mrf.mxu2 }
 0x17a   : > { %v728_v44 = vadd.f32 %v721_v40, %v714_v41  ;;  %v561_v46 = vadd.f32 %v557_v42, %v484_v43 }
 0x17c   : > { %v730_v45 = vmax.f32 %v728_v44, 0.0 }
 0x17d   : > { %v634_v36 = vpop.f32.mrf.mxu1 }
 0x17e   : > { %732 = vst [vmem:[%s192_s29] sm:$0xff] %v730_v45  ;;  %v638_v29 = vadd.f32 %v634_v36, %v561_v46 }
 0x180   : > { %v715_v49 = vadd.f32 %v711_v47, %v638_v29 }
 0x182   : > { %v729_v50 = vadd.f32 %v726_v48, %v715_v49 }
 0x184   : > { %v731_v51 = vmax.f32 %v729_v50, 0.0 }
 0x186   : > { %733 = vst [vmem:[%s192_s29 + $0x8] sm:$0xf] %v731_v51 }
 0x187 PF: > { %s13_s16 = sadd.s32 1, %s1167_s16   ;;  %s1426_s12 = smov %s1159_s14 }
 0x188   : > { %p10_p7 = scmp.ge.s32.totalorder %s13_s16, 18   ;;  %s1427_s13 = smov %s1163_s15 }
 0x189   : > { %s1428_s14 = smov %s1431_s17  ;;  %s1429_s15 = smov %s1435_s18 }
 0x18a   :  { %12 = sbr.rel (!%p10_p7) target bundleno = 3 (0x3), region = 69 }

// kernel: _spectral_conv_jit.1
= control target key start
LH: loop header
LB: loop body
LE: loop exit
PB: predicated region body
PF: predicated region fallthrough
CT: control target
= control target key end

     0   :  { %s810_s12 = smov 0   ;;  %s812_s13 = smov 0   ;;  %s983_s0 = inlined_call_operand.vmem [shape: f32[7,12,56], index: 0, kind: input, shape index: {}]   ;;  %s984_s1 = inlined_call_operand.vmem [shape: f32[12,1], index: 1, kind: input, shape index: {}]   ;;  %s985_s2 = inlined_call_operand.vmem [shape: f32[2,14,56,128], index: 2, kind: input, shape index: {}]   ;;  %s986_s3 = inlined_call_operand.vmem [shape: f32[2,8,12,128], index: 3, kind: output, shape index: {}]  }
   0x1   :  { %s814_s14 = smov 0   ;;  %s816_s15 = smov 0  }
   0x2   :  { %s818_s16 = smov 0  }
   0x3 LB: > { %s22_s17 = sadd.s32 1, %s779_s14  ;;  %s25_s18 = sadd.s32 1, %s783_s15  ;;  %s787_s16 = sphi %s818_s16, %s13_s16   ;;  %s783_s15 = sphi %s816_s15, %s990_s15   ;;  %s779_s14 = sphi %s814_s14, %s989_s14   ;;  %s775_s13 = sphi %s812_s13, %s988_s13   ;;  %s771_s12 = sphi %s810_s12, %s987_s12  }
   0x4   : > { %p23_p0 = scmp.ge.s32.totalorder %s22_s17, 8  ;;  %p624_p1 = scmp.ge.s32.totalorder %s787_s16, 1 }
   0x5   : > { %p151_p2 = scmp.lt.s32.totalorder %s787_s16, 17 }
   0x6   : > { %s992_s17 = smov (%p23_p0, %s22_s17), 0  ;;  %s994_s18 = smov (!%p23_p0, %s25_s18), %s783_s15 }
   0x7   : > { %p152_p3 = pnand %p624_p1, %p151_p2  ;;  %p27_p4 = scmp.ge.s32.totalorder %s994_s18, 2 }
   0x8   : > { %p179_p5 = scmp.lt.s32.totalorder (!%p152_p3), %s775_s13, 1  ;;  %s195_s19 = smul.u32 (!%p152_p3), 56, %s771_s12 }
   0x9   : > { %s996_s18 = smov (%p27_p4, %s994_s18), 0  ;;  %155 = sbr.rel (%p152_p3) target bundleno = 200 (0xc8), region = 32 }
   0xa   : > { %p186_p6 = scmp.lt.s32.totalorder (!%p152_p3), %s771_s12, 7 }
   0xe   : > { %s998_s13 = smov (!%p179_p5, %s775_s13), 1  ;;  %v629_v28 = vld [vmem:[%s983_s0 + $0x10] sm:$0xff]  ;;  %vm217_vm0 = vcmask 457728   ;;  %v193_v29 = vld [vmem:[%s983_s0] sm:$0xff]  ;;  %v630_v42 = vld [vmem:[%s983_s0 + $0x18] sm:$0xf] }
   0xf   : > { %s706_s20 = smul.u32 784, %s998_s13  ;;  %v642_v30 = vld [vmem:[%s983_s0 + $0x20] sm:$0xff]  ;;  %v653_v31 = vld [vmem:[%s983_s0 + $0x30] sm:$0xff]  ;;  %v194_v43 = vld [vmem:[%s983_s0 + $0x8] sm:$0xf]  ;;  %v789_v62 = vmov 0  }
  0x10   : > { %v643_v44 = vld [vmem:[%s983_s0 + $0x28] sm:$0xf]  ;;  %v654_v45 = vld [vmem:[%s983_s0 + $0x38] sm:$0xf]  ;;  %v664_v57 = vld [vmem:[%s983_s0 + $0x40] sm:$0xff]  ;;  %748 = vset.pattern.permute.xlu0 %v789_v62  ;;  %s1000_s12 = smov (!%p186_p6, %s771_s12), 7 }
  0x11   : > { %s183_s23 = scalar_lea.vmem %s985_s2, %s706_s20  ;;  %v665_v58 = vld [vmem:[%s983_s0 + $0x48] sm:$0xf]  ;;  %v675_v59 = vld [vmem:[%s983_s0 + $0x50] sm:$0xff]  ;;  %v686_v60 = vld [vmem:[%s983_s0 + $0x60] sm:$0xff]  ;;  %s626_s10 = sshll.u32 %s1000_s12, 1 }
  0x12   : > { %s849_s24 = scalar_lea.vmem %s183_s23, %s195_s19  ;;  %v496_v61 = vld [vmem:[%s984_s1] sm:$0xff]  ;;  %v676_v63 = vld [vmem:[%s983_s0 + $0x58] sm:$0xf]  ;;  %s627_s11 = sshll.u32 %s998_s13, 4 }
  0x13   : > { %v637_v0 = vld [vmem:[%s849_s24 + $0x68] sm:$0xff]  ;;  %v203_v1 = vld [vmem:[%s849_s24 + $0x30] sm:$0xff]  ;;  %v650_v2 = vld [vmem:[%s849_s24 + $0xa0] sm:$0xff]  ;;  %500 = vperm.xlu0 %748, %v496_v61   ;;  %s190_s19 = sadd.s32 %s627_s11, %s626_s10 }
  0x14   : > { %233 = vmatpush.msra.mxu0 %v637_v0  ;;  %262 = vmatpush.msra.mxu1 %v203_v1  ;;  %v661_v3 = vld [vmem:[%s849_s24 + $0xd8] sm:$0xff]  ;;  %v636_v4 = vld [vmem:[%s849_s24 + $0x60] sm:$0xff]  ;;  %v202_v5 = vld [vmem:[%s849_s24 + $0x28] sm:$0xff]  ;;  %s628_s20 = sshll.u32 %s190_s19, 3 }
  0x15   : > { %304 = vmatpush.msra.mxu2 %v650_v2  ;;  %348 = vmatpush.msra.mxu3 %v661_v3  ;;  %v649_v6 = vld [vmem:[%s849_s24 + $0x98] sm:$0xff]  ;;  %v660_v7 = vld [vmem:[%s849_s24 + $0xd0] sm:$0xff]  ;;  %v201_v9 = vld [vmem:[%s849_s24 + $0x20] sm:$0xff]  ;;  %s192_s23 = scalar_lea.vmem %s986_s3, %s628_s20 }
  0x16   : > { %v635_v8 = vld [vmem:[%s849_s24 + $0x58] sm:$0xff]  ;;  %234 = vmatpush.msra.mxu0 %v636_v4  ;;  %263 = vmatpush.msra.mxu1 %v202_v5  ;;  %v648_v10 = vld [vmem:[%s849_s24 + $0x90] sm:$0xff]  ;;  %v659_v11 = vld [vmem:[%s849_s24 + $0xc8] sm:$0xff] }
  0x17   : > { %305 = vmatpush.msra.mxu2 %v649_v6  ;;  %349 = vmatpush.msra.mxu3 %v660_v7  ;;  %v634_v12 = vld [vmem:[%s849_s24 + $0x50] sm:$0xff]  ;;  %v200_v13 = vld [vmem:[%s849_s24 + $0x18] sm:$0xff]  ;;  %v647_v14 = vld [vmem:[%s849_s24 + $0x88] sm:$0xff] }
  0x18   : > { %235 = vmatpush.msra.mxu0 %v635_v8  ;;  %264 = vmatpush.msra.mxu1 %v201_v9  ;;  %v658_v15 = vld [vmem:[%s849_s24 + $0xc0] sm:$0xff]  ;;  %v633_v16 = vld [vmem:[%s849_s24 + $0x48] sm:$0xff]  ;;  %v199_v17 = vld [vmem:[%s849_s24 + $0x10] sm:$0xff] }
  0x19   : > { %306 = vmatpush.msra.mxu2 %v648_v10  ;;  %350 = vmatpush.msra.mxu3 %v659_v11  ;;  %v646_v18 = vld [vmem:[%s849_s24 + $0x80] sm:$0xff]  ;;  %v657_v19 = vld [vmem:[%s849_s24 + $0xb8] sm:$0xff]  ;;  %v198_v21 = vld [vmem:[%s849_s24 + $0x8] sm:$0xff] }
  0x1a   : > { %236 = vmatpush.msra.mxu0 %v634_v12  ;;  %265 = vmatpush.msra.mxu1 %v200_v13  ;;  %v632_v20 = vld [vmem:[%s849_s24 + $0x40] sm:$0xff]  ;;  %v645_v22 = vld [vmem:[%s849_s24 + $0x78] sm:$0xff]  ;;  %v656_v23 = vld [vmem:[%s849_s24 + $0xb0] sm:$0xff] }
  0x1b   : > { %307 = vmatpush.msra.mxu2 %v647_v14  ;;  %351 = vmatpush.msra.mxu3 %v658_v15  ;;  %v631_v24 = vld [vmem:[%s849_s24 + $0x38] sm:$0xff]  ;;  %v197_v25 = vld [vmem:[%s849_s24] sm:$0xff]  ;;  %v644_v26 = vld [vmem:[%s849_s24 + $0x70] sm:$0xff] }
  0x1c   : > { %237 = vmatpush.msra.mxu0 %v633_v16  ;;  %266 = vmatpush.msra.mxu1 %v199_v17  ;;  %v655_v27 = vld [vmem:[%s849_s24 + $0xa8] sm:$0xff]  ;;  %v694_v32 = vld [vmem:[%s849_s24 + $0x180] sm:$0xff]  ;;  %v672_v33 = vld [vmem:[%s849_s24 + $0x110] sm:$0xff] }
  0x1d   : > { %308 = vmatpush.msra.mxu2 %v646_v18  ;;  %352 = vmatpush.msra.mxu3 %v657_v19  ;;  %v683_v34 = vld [vmem:[%s849_s24 + $0x148] sm:$0xff]  ;;  %v693_v35 = vld [vmem:[%s849_s24 + $0x178] sm:$0xff]  ;;  %v682_v37 = vld [vmem:[%s849_s24 + $0x140] sm:$0xff] }
  0x1e   : > { %238 = vmatpush.msra.mxu0 %v632_v20  ;;  %267 = vmatpush.msra.mxu1 %v198_v21  ;;  %v671_v36 = vld [vmem:[%s849_s24 + $0x108] sm:$0xff]  ;;  %v692_v38 = vld [vmem:[%s849_s24 + $0x170] sm:$0xff]  ;;  %v670_v39 = vld [vmem:[%s849_s24 + $0x100] sm:$0xff] }
  0x1f   : > { %309 = vmatpush.msra.mxu2 %v645_v22  ;;  %353 = vmatpush.msra.mxu3 %v656_v23  ;;  %v681_v40 = vld [vmem:[%s849_s24 + $0x138] sm:$0xff]  ;;  %v691_v41 = vld [vmem:[%s849_s24 + $0x168] sm:$0xff]  ;;  %v680_v47 = vld [vmem:[%s849_s24 + $0x130] sm:$0xff] }
  0x20   : > { %239 = vmatpush.msra.mxu0 %v631_v24  ;;  %268 = vmatpush.msra.mxu1 %v197_v25  ;;  %v669_v46 = vld [vmem:[%s849_s24 + $0xf8] sm:$0xff]  ;;  %v690_v48 = vld [vmem:[%s849_s24 + $0x160] sm:$0xff]  ;;  %v668_v49 = vld [vmem:[%s849_s24 + $0xf0] sm:$0xff] }
  0x21   : > { %310 = vmatpush.msra.mxu2 %v644_v26  ;;  %354 = vmatpush.msra.mxu3 %v655_v27  ;;  %v679_v50 = vld [vmem:[%s849_s24 + $0x128] sm:$0xff]  ;;  %v689_v51 = vld [vmem:[%s849_s24 + $0x158] sm:$0xff]  ;;  %v678_v53 = vld [vmem:[%s849_s24 + $0x120] sm:$0xff] }
  0x22   : > { %638 = vmatmul.msk.f32.vlgmr.msra.gmra.mxu0 %vm217_vm0, %v629_v28  ;;  %640 = vmatmul.msk.f32.vlgmr.msra.gmra.mxu1 %vm217_vm0, %v193_v29  ;;  %v667_v52 = vld [vmem:[%s849_s24 + $0xe8] sm:$0xff]  ;;  %v688_v54 = vld [vmem:[%s849_s24 + $0x150] sm:$0xff]  ;;  %v666_v55 = vld [vmem:[%s849_s24 + $0xe0] sm:$0xff] }
  0x23   : > { %651 = vmatmul.msk.f32.vlgmr.msra.gmra.mxu2 %vm217_vm0, %v642_v30  ;;  %662 = vmatmul.msk.f32.vlgmr.msra.gmra.mxu3 %vm217_vm0, %v653_v31  ;;  %v677_v56 = vld [vmem:[%s849_s24 + $0x118] sm:$0xff]  ;;  %v687_v0 = vld [vmem:[%s983_s0 + $0x68] sm:$0xf] }
  0x24   : > { %480 = vmatpush.msrb.mxu2 %v694_v32  ;;  %392 = vmatpush.msrb.mxu0 %v672_v33  ;;  %v497_v1 = vld [vmem:[%s984_s1 + $0x8] sm:$0xf] }
  0x25   : > { %699 = vmatpush.msrb.mxu3 %v672_v33  ;;  %436 = vmatpush.msrb.mxu1 %v683_v34 }
  0x26   : > { %481 = vmatpush.msrb.mxu2 %v693_v35  ;;  %393 = vmatpush.msrb.mxu0 %v671_v36 }
  0x27   : > { %700 = vmatpush.msrb.mxu3 %v671_v36  ;;  %437 = vmatpush.msrb.mxu1 %v682_v37 }
  0x28   : > { %482 = vmatpush.msrb.mxu2 %v692_v38  ;;  %394 = vmatpush.msrb.mxu0 %v670_v39 }
  0x29   : > { %701 = vmatpush.msrb.mxu3 %v670_v39  ;;  %438 = vmatpush.msrb.mxu1 %v681_v40 }
  0x2a   : > { %483 = vmatpush.msrb.mxu2 %v691_v41  ;;  %639 = vmatmul.msk.f32.gmra.mxu0 %vm217_vm0, %v630_v42 }
  0x2b   : > { %641 = vmatmul.msk.f32.gmra.mxu1 %vm217_vm0, %v194_v43  ;;  %652 = vmatmul.msk.f32.gmra.mxu2 %vm217_vm0, %v643_v44 }
  0x2c   : > { %663 = vmatmul.msk.f32.gmra.mxu3 %vm217_vm0, %v654_v45  ;;  %395 = vmatpush.msrb.mxu0 %v669_v46 }
  0x2d   : > { %702 = vmatpush.msrb.mxu3 %v669_v46  ;;  %439 = vmatpush.msrb.mxu1 %v680_v47 }
  0x2e   : > { %484 = vmatpush.msrb.mxu2 %v690_v48  ;;  %396 = vmatpush.msrb.mxu0 %v668_v49 }
  0x2f   : > { %703 = vmatpush.msrb.mxu3 %v668_v49  ;;  %440 = vmatpush.msrb.mxu1 %v679_v50 }
  0x30   : > { %485 = vmatpush.msrb.mxu2 %v689_v51  ;;  %397 = vmatpush.msrb.mxu0 %v667_v52 }
  0x31   : > { %704 = vmatpush.msrb.mxu3 %v667_v52  ;;  %441 = vmatpush.msrb.mxu1 %v678_v53 }
  0x32   : > { %486 = vmatpush.msrb.mxu2 %v688_v54  ;;  %398 = vmatpush.msrb.mxu0 %v666_v55 }
  0x33   : > { %705 = vmatpush.msrb.mxu3 %v666_v55  ;;  %442 = vmatpush.msrb.mxu1 %v677_v56 }
  0x34   : > { %673 = vmatmul.msk.f32.vlgmr.msrb.gmra.mxu0 %vm217_vm0, %v664_v57  ;;  %674 = vmatmul.msk.f32.vlgmr.msrb.gmra.mxu3 %vm217_vm0, %v665_v58 }
  0x35   : > { %684 = vmatmul.msk.f32.vlgmr.msrb.gmra.mxu1 %vm217_vm0, %v675_v59  ;;  %695 = vmatmul.msk.f32.vlgmr.msrb.gmra.mxu2 %vm217_vm0, %v686_v60 }
  0x36   : > { %505 = vperm.xlu0 %748, %v497_v1  }
  0x3d   : > { %685 = vmatmul.msk.f32.gmra.mxu1 %vm217_vm0, %v676_v63  ;;  %696 = vmatmul.msk.f32.gmra.mxu2 %vm217_vm0, %v687_v0 }
  0x85   : > { %v501_v18 = vpop.permute.xlu0 %500 }
  0x9f   : > { %v241_v2 = vpop.f32.mrf.mxu0  ;;  %v270_v3 = vpop.f32.mrf.mxu1 }
  0xa0   : > { %v271_v8 = vadd.f32 %v270_v3, %v241_v2 }
  0xa6   : > { %v312_v4 = vpop.f32.mrf.mxu2  ;;  %v356_v5 = vpop.f32.mrf.mxu3 }
  0xa7   : > { %v244_v6 = vpop.f32.mrf.mxu0  ;;  %v318_v9 = vadd.f32 %v312_v4, %v271_v8 }
  0xa8   : > { %v273_v7 = vpop.f32.mrf.mxu1  ;;  %v506_v31 = vpop.permute.xlu0 %505 }
  0xa9   : > { %v362_v12 = vadd.f32 %v356_v5, %v318_v9  ;;  %v274_v13 = vadd.f32 %v273_v7, %v244_v6 }
  0xae   : > { %v315_v10 = vpop.f32.mrf.mxu2 }
  0xaf   : > { %v359_v11 = vpop.f32.mrf.mxu3  ;;  %v319_v17 = vadd.f32 %v315_v10, %v274_v13 }
  0xb1   : > { %v400_v14 = vpop.f32.mrf.mxu0  ;;  %v363_v22 = vadd.f32 %v359_v11, %v319_v17 }
  0xb2   : > { %v444_v15 = vpop.f32.mrf.mxu1  ;;  %v406_v16 = vadd.f32 %v400_v14, %v362_v12 }
  0xb4   : > { %v450_v19 = vadd.f32 %v444_v15, %v406_v16 }
  0xb7   : > { %v403_v20 = vpop.f32.mrf.mxu3 }
  0xb8   : > { %v488_v21 = vpop.f32.mrf.mxu2  ;;  %v407_v24 = vadd.f32 %v403_v20, %v363_v22 }
  0xb9   : > { %v494_v23 = vadd.f32 %v488_v21, %v450_v19 }
  0xba   : > { %v447_v26 = vpop.f32.mrf.mxu1 }
  0xbb   : > { %v508_v25 = vadd.f32 %v501_v18, %v494_v23  ;;  %v451_v28 = vadd.f32 %v447_v26, %v407_v24 }
  0xbd   : > { %v510_v27 = vmax.f32 %v508_v25, 0.0 }
  0xbf   : > { %512 = vst [vmem:[%s192_s23] sm:$0xff] %v510_v27 }
  0xc0   : > { %v491_v29 = vpop.f32.mrf.mxu2 }
  0xc1   : > { %v495_v30 = vadd.f32 %v491_v29, %v451_v28 }
  0xc3   : > { %v509_v32 = vadd.f32 %v506_v31, %v495_v30 }
  0xc5   : > { %v511_v33 = vmax.f32 %v509_v32, 0.0 }
  0xc7   : > { %513 = vst [vmem:[%s192_s23 + $0x8] sm:$0xf] %v511_v33 }
  0xc8 PF: > { %s13_s16 = sadd.s32 1, %s787_s16   ;;  %s987_s12 = smov %s779_s14 }
  0xc9   : > { %p10_p7 = scmp.ge.s32.totalorder %s13_s16, 18   ;;  %s988_s13 = smov %s783_s15 }
  0xca   : > { %s989_s14 = smov %s992_s17  ;;  %s990_s15 = smov %s996_s18 }
  0xcb   :  { %12 = sbr.rel (!%p10_p7) target bundleno = 3 (0x3), region = 75 }

</bundles_post_ra>
